<compile_context>
chip_gen: v7x
topology: tpu7x:2x2x1
jax: 0.10.0
libtpu: 0.0.40
codegen_flags: <defaults>
</compile_context>

<pallas_src>
import math
from functools import partial

import numpy as np
import jax
import jax.numpy as jnp
from jax.experimental import pallas as pl
from jax.experimental.pallas import tpu as pltpu


# --------------------- gate construction (host-side, plain numpy) -----------

def _rot_matrix(phi, theta, omega):
    # PennyLane Rot(phi, theta, omega) = RZ(omega) @ RY(theta) @ RZ(phi)
    c, s = np.cos(theta / 2.0), np.sin(theta / 2.0)
    return np.array(
        [[np.exp(-0.5j * (phi + omega)) * c, -np.exp(0.5j * (phi - omega)) * s],
         [np.exp(0.5j * (phi - omega)) * s,  np.exp(0.5j * (phi + omega)) * c]],
        dtype=np.complex128)


def _single_qubit_full(gate, wire, n_wires):
    # wire 0 is the most-significant bit (PennyLane convention)
    full = np.array([[1.0 + 0.0j]])
    for j in range(n_wires):
        full = np.kron(full, gate if j == wire else np.eye(2))
    return full


def _cnot_full(ctrl, tgt, n_wires):
    dim = 2 ** n_wires
    U = np.zeros((dim, dim), dtype=np.complex128)
    for s in range(dim):
        if (s >> (n_wires - 1 - ctrl)) & 1:
            sp = s ^ (1 << (n_wires - 1 - tgt))
        else:
            sp = s
        U[sp, s] = 1.0
    return U


def _strongly_entangling_unitary(w, n_wires):
    # w: (qdepth, n_wires, 3); CNOT imprimitive, PennyLane default ranges
    dim = 2 ** n_wires
    U = np.eye(dim, dtype=np.complex128)
    for l in range(w.shape[0]):
        for j in range(n_wires):
            g = _rot_matrix(w[l, j, 0], w[l, j, 1], w[l, j, 2])
            U = _single_qubit_full(g, j, n_wires) @ U
        if n_wires > 1:
            r = (l % (n_wires - 1)) + 1
            for j in range(n_wires):
                U = _cnot_full(j, (j + r) % n_wires, n_wires) @ U
    return U


def _bit_matrix(n_wires):
    # bits[j, s] = bit_j(s) in {0,1}   (wire 0 = MSB)
    dim = 2 ** n_wires
    bits = np.zeros((n_wires, dim), dtype=np.float32)
    for j in range(n_wires):
        for s in range(dim):
            bits[j, s] = float((s >> (n_wires - 1 - j)) & 1)
    return bits


# ------------------------------- Pallas kernel -------------------------------

def _qnn_kernel(x_ref, wt_ref, b_ref, bits_ref, ub_ref, out_ref,
                *, wires, pp, scale):
    """One batch tile of: linear -> RY product state -> U -> probs -> postproc.

    x_ref   : (TB, pixels)        flattened image tile, f32
    wt_ref  : (pixels, wires)     0.5 * W^T (RY half-angle folded on host), f32
    b_ref   : (1, wires)          0.5 * bias, f32
    bits_ref: (wires, dim)        bit-selector table in {0,1}, f32
    ub_ref  : (dim, 2*pp)         [Re(U^T) | Im(U^T)] sliced to pp cols, bf16
    out_ref : (TB, pp)            lane-dense post-processed probabilities, f32
    """
    # fused linear_down (produces theta/2 directly)
    th = jnp.dot(x_ref[...], wt_ref[...],
                 preferred_element_type=jnp.float32) + b_ref[...]   # (TB, wires)
    c = jnp.cos(th)
    s = jnp.sin(th)
    sd = s - c
    bits = bits_ref[...]                                            # (wires, dim)

    # |psi0> = kron_j RY(theta_j)|0>  — real product state built on the VPU:
    # amp[b, state] = prod_j (bit_j ? sin : cos)
    amp = c[:, 0:1] + bits[0:1, :] * sd[:, 0:1]
    for j in range(1, wires):
        amp = amp * (c[:, j:j + 1] + bits[j:j + 1, :] * sd[:, j:j + 1])

    # single block-complex matmul on bf16 operands with f32 accumulation:
    # [Re psi' | Im psi'](first pp cols) = psi0 @ [Re(U^T)|Im(U^T)]
    rs = jnp.dot(amp.astype(jnp.bfloat16), ub_ref[...],
                 preferred_element_type=jnp.float32)                # (TB, 2*pp)
    sr = rs[:, :pp]
    si = rs[:, pp:]
    probs = sr * sr + si * si

    # _post_process (scale + clamp); the exact [:pixels] slice is done in the
    # wrapper (pp is pixels rounded up to a lane multiple, capped at dim).
    out_ref[...] = jnp.clip(probs * scale, 0.0, 1.0)


# --------------------------------- wrapper -----------------------------------

class QNNAPallas:
    def __init__(self, qdepth, shape, add_noise=0, seed=0, batch_tile=256):
        if isinstance(shape, int):
            shape = (shape, shape)
        self.qdepth = qdepth
        self.add_noise = add_noise
        self.width, self.height = shape
        self.pixels = self.width * self.height
        self.wires = math.ceil(math.log2(self.pixels))
        self.dim = 2 ** self.wires
        # only compute the probability columns the wrapper keeps (lane-rounded)
        self.pp = min(self.dim, ((self.pixels + 127) // 128) * 128)
        self.batch_tile = max(8, (int(batch_tile) + 7) // 8 * 8)
        # single-buffer resident tables if this jax exposes pipeline_mode=Buffered
        self._single_buffer_consts = hasattr(pl, "Buffered")
        # TODO(synk): add_noise in {1,2,3} (PhaseDamping / AmplitudeDamping /
        # DepolarizingChannel) requires density-matrix simulation; only the
        # noiseless path (add_noise=0, the module default) is implemented.

        key = jax.random.PRNGKey(seed)
        k_w, k_lw, k_lb = jax.random.split(key, 3)

        # nn.Linear(pixels, wires) default init: U(-k, k), k = 1/sqrt(in_features)
        bound = 1.0 / math.sqrt(self.pixels)
        lin_w = jax.random.uniform(k_lw, (self.wires, self.pixels),
                                   minval=-bound, maxval=bound, dtype=jnp.float32)
        lin_b = jax.random.uniform(k_lb, (self.wires,),
                                   minval=-bound, maxval=bound, dtype=jnp.float32)
        # fold the RY half-angle (theta/2) into the linear weights on the host
        self.wt_half = jnp.asarray(0.5 * lin_w.T)                    # (pixels, wires)
        self.b_half = jnp.asarray(0.5 * lin_b).reshape(1, self.wires)

        # StronglyEntanglingLayers parameters: randn * 0.4
        self.weights = jax.random.normal(
            k_w, (self.qdepth, self.wires, 3), dtype=jnp.float32) * 0.4

        # pre-compose ALL entangling layers into one dense (dim, dim) unitary,
        # keep only the first pp output columns, store as bf16 for the MXU
        U = _strongly_entangling_unitary(
            np.asarray(self.weights, dtype=np.float64), self.wires)
        UT = U.T                                                     # row-vector convention
        ub_np = np.concatenate([np.real(UT[:, :self.pp]),
                                np.imag(UT[:, :self.pp])],
                               axis=1).astype(np.float32)            # (dim, 2*pp)
        self.ub = jnp.asarray(ub_np).astype(jnp.bfloat16)
        self.bits = jnp.asarray(_bit_matrix(self.wires))             # (wires, dim)

    # ------------------------------------------------------------------ call --
    def __call__(self, x):
        b, c, w, h = x.shape
        assert c == 1 and w == self.width and h == self.height
        x2 = x.reshape(b, self.pixels).astype(jnp.float32)           # 'b 1 w h -> b (w h)'

        # batch tiling: sublane multiple of 8, and >=2 grid steps whenever the
        # batch allows so the "parallel" axis can shard across v7x's 2 TCs.
        b8 = ((b + 7) // 8) * 8
        n_tiles = max(1, -(-b8 // self.batch_tile))
        if b8 >= 16:
            n_tiles = max(n_tiles, 2)
        tb = ((-(-b8 // n_tiles) + 7) // 8) * 8
        b_pad = n_tiles * tb
        if b_pad != b:
            x2 = jnp.pad(x2, ((0, b_pad - b), (0, 0)))

        kernel = partial(_qnn_kernel, wires=self.wires, pp=self.pp,
                         scale=float(self.pixels))

        # generation-aware scoped-VMEM budget: resident tables (counted at the
        # default 2x buffering), double-buffered I/O tiles, working set; capped
        # below physical VMEM (~100 MiB on v5e/v6e, ~50 MiB on v7x).
        try:
            vmem_cap = int(pltpu.get_tpu_info().vmem_capacity_bytes)
        except Exception:
            vmem_cap = 64 * 2 ** 20                                   # conservative fallback
        ceiling = max(32 * 2 ** 20, int(0.78 * vmem_cap))
        resident = 2 * (4 * (self.pixels * self.wires + self.wires
                             + self.wires * self.dim)
                        + 2 * self.dim * 2 * self.pp)                 # ub is bf16
        io = 2 * 4 * tb * (self.pixels + self.pp)
        work = 4 * tb * (3 * self.dim + 4 * self.pp + 4 * self.wires)
        need = resident + io + work
        vmem_limit = int(min(ceiling, max(32 * 2 ** 20, 2 * need)))

        def _run(single_buffer_consts):
            if single_buffer_consts:
                def const(shape):
                    return pl.BlockSpec(shape, lambda i: (0, 0),
                                        pipeline_mode=pl.Buffered(1))
            else:
                def const(shape):
                    return pl.BlockSpec(shape, lambda i: (0, 0))
            in_specs = [
                pl.BlockSpec((tb, self.pixels), lambda i: (i, 0)),    # x tile
                const((self.pixels, self.wires)),                     # 0.5*W^T (resident)
                const((1, self.wires)),                               # 0.5*bias
                const((self.wires, self.dim)),                        # bit table
                const((self.dim, 2 * self.pp)),                       # [Re|Im](U^T), bf16
            ]
            return pl.pallas_call(
                kernel,
                out_shape=jax.ShapeDtypeStruct((b_pad, self.pp), jnp.float32),
                grid=(b_pad // tb,),
                in_specs=in_specs,
                out_specs=pl.BlockSpec((tb, self.pp), lambda i: (i, 0)),
                compiler_params=pltpu.CompilerParams(
                    dimension_semantics=("parallel",),
                    vmem_limit_bytes=vmem_limit),
            )(x2, self.wt_half, self.b_half, self.bits, self.ub)

        if self._single_buffer_consts:
            try:
                probs = _run(True)
            except Exception:
                # older jax without pipeline_mode / Buffered(1): plain specs
                self._single_buffer_consts = False
                probs = _run(False)
        else:
            probs = _run(False)

        out = probs[:b, :self.pixels]                                 # slice in wrapper
        return out.reshape(b, 1, self.width, self.height)             # 'b (w h) -> b 1 w h'


# ------------------------------ pure-JAX reference ---------------------------

def _reference(x_flat, wt_half, b_half, bits, ub_bf16, pixels, pp):
    """Mirrors the kernel numerics (f32 angles/state, bf16 matmul operands)."""
    th = x_flat @ wt_half + b_half                                    # (b, wires)
    c, s = jnp.cos(th), jnp.sin(th)
    sel = jnp.where(bits[None, :, :] > 0.5, s[:, :, None], c[:, :, None])
    amp = jnp.prod(sel, axis=1)                                       # (b, dim)
    rs = jnp.dot(amp.astype(jnp.bfloat16), ub_bf16,
                 preferred_element_type=jnp.float32)
    probs = rs[:, :pp] ** 2 + rs[:, pp:] ** 2
    return jnp.clip(probs[:, :pixels] * float(pixels), 0.0, 1.0)


if __name__ == "__main__":
    # small shapes: b=8, c=1, w=h=4 -> pixels=16, wires=4, dim=16
    b, c, w, h = 8, 1, 4, 4
    key = jax.random.PRNGKey(0)
    x = jax.random.normal(key, (b, c, w, h), dtype=jnp.float32)

    model = QNNAPallas(qdepth=3, shape=(w, h), add_noise=0, seed=0)
    out = jax.block_until_ready(model(x))
    assert out.shape == (b, 1, w, h)

    # check against a pure-JAX reference of the same circuit (same bf16
    # quantization of the unitary; atol absorbs EUP-vs-XLA cos/sin deltas).
    ref = _reference(x.reshape(b, w * h).astype(jnp.float32), model.wt_half,
                     model.b_half, model.bits, model.ub, model.pixels, model.pp)
    np.testing.assert_allclose(np.asarray(out).reshape(b, -1),
                               np.asarray(ref), atol=1e-2)
    print("KERNEL_OK")
</pallas_src>

<mosaic_0001>
module attributes {stable_mosaic.version = 11 : i64} {
  func.func @_qnn_kernel(%arg0: i32, %arg1: memref<8x16xf32, #tpu.memory_space<vmem>>, %arg2: memref<16x4xf32, #tpu.memory_space<vmem>>, %arg3: memref<1x4xf32, #tpu.memory_space<vmem>>, %arg4: memref<4x16xf32, #tpu.memory_space<vmem>>, %arg5: memref<16x32xbf16, #tpu.memory_space<vmem>>, %arg6: memref<8x16xf32, #tpu.memory_space<vmem>>) attributes {dimension_semantics = [#tpu.dimension_semantics<parallel>], iteration_bounds = array<i64: 1>, scalar_prefetch = 0 : i64, scratch_operands = 0 : i64, tpu.core_type = #tpu.core_type<tc>, window_params = [{transform_indices = @transform_0, window_bounds = array<i64: 8, 16>}, {pipeline_mode = #tpu.pipeline_mode<synchronous>, transform_indices = @transform_1, window_bounds = array<i64: 16, 4>}, {pipeline_mode = #tpu.pipeline_mode<synchronous>, transform_indices = @transform_2, window_bounds = array<i64: 1, 4>}, {pipeline_mode = #tpu.pipeline_mode<synchronous>, transform_indices = @transform_3, window_bounds = array<i64: 4, 16>}, {pipeline_mode = #tpu.pipeline_mode<synchronous>, transform_indices = @transform_4, window_bounds = array<i64: 16, 32>}, {transform_indices = @transform_5, window_bounds = array<i64: 8, 16>}]} {
    %c0 = arith.constant 0 : index
    %c0_0 = arith.constant 0 : index
    %0 = vector.load %arg1[%c0, %c0_0] : memref<8x16xf32, #tpu.memory_space<vmem>>, vector<8x16xf32>
    %c0_1 = arith.constant 0 : index
    %c0_2 = arith.constant 0 : index
    %1 = vector.load %arg2[%c0_1, %c0_2] : memref<16x4xf32, #tpu.memory_space<vmem>>, vector<16x4xf32>
    %cst = arith.constant dense<0.000000e+00> : vector<8x4xf32>
    %2 = tpu.matmul %0, %1, %cst {dimension_numbers = #tpu.dot_dimension_numbers<[1], [0], [0], [1], [0, 0, 1, 1], [], []>} : vector<8x16xf32>, vector<16x4xf32>, vector<8x4xf32> -> vector<8x4xf32>
    %c0_3 = arith.constant 0 : index
    %c0_4 = arith.constant 0 : index
    %3 = vector.load %arg3[%c0_3, %c0_4] : memref<1x4xf32, #tpu.memory_space<vmem>>, vector<1x4xf32>
    %4 = vector.broadcast %3 : vector<1x4xf32> to vector<8x4xf32>
    %5 = arith.addf %2, %4 : vector<8x4xf32>
    %6 = math.cos %5 : vector<8x4xf32>
    %7 = math.sin %5 : vector<8x4xf32>
    %8 = arith.subf %7, %6 : vector<8x4xf32>
    %c0_5 = arith.constant 0 : index
    %c0_6 = arith.constant 0 : index
    %9 = vector.load %arg4[%c0_5, %c0_6] : memref<4x16xf32, #tpu.memory_space<vmem>>, vector<4x16xf32>
    %10 = vector.extract_strided_slice %6 {offsets = [0, 0], sizes = [8, 1], strides = [1, 1]} : vector<8x4xf32> to vector<8x1xf32>
    %11 = vector.extract_strided_slice %9 {offsets = [0, 0], sizes = [1, 16], strides = [1, 1]} : vector<4x16xf32> to vector<1x16xf32>
    %12 = vector.extract_strided_slice %8 {offsets = [0, 0], sizes = [8, 1], strides = [1, 1]} : vector<8x4xf32> to vector<8x1xf32>
    %13 = vector.broadcast %11 : vector<1x16xf32> to vector<8x16xf32>
    %14 = vector.broadcast %12 : vector<8x1xf32> to vector<8x16xf32>
    %15 = arith.mulf %13, %14 : vector<8x16xf32>
    %16 = vector.broadcast %10 : vector<8x1xf32> to vector<8x16xf32>
    %17 = arith.addf %16, %15 : vector<8x16xf32>
    %18 = vector.extract_strided_slice %6 {offsets = [0, 1], sizes = [8, 1], strides = [1, 1]} : vector<8x4xf32> to vector<8x1xf32>
    %19 = vector.extract_strided_slice %9 {offsets = [1, 0], sizes = [1, 16], strides = [1, 1]} : vector<4x16xf32> to vector<1x16xf32>
    %20 = vector.extract_strided_slice %8 {offsets = [0, 1], sizes = [8, 1], strides = [1, 1]} : vector<8x4xf32> to vector<8x1xf32>
    %21 = vector.broadcast %19 : vector<1x16xf32> to vector<8x16xf32>
    %22 = vector.broadcast %20 : vector<8x1xf32> to vector<8x16xf32>
    %23 = arith.mulf %21, %22 : vector<8x16xf32>
    %24 = vector.broadcast %18 : vector<8x1xf32> to vector<8x16xf32>
    %25 = arith.addf %24, %23 : vector<8x16xf32>
    %26 = arith.mulf %17, %25 : vector<8x16xf32>
    %27 = vector.extract_strided_slice %6 {offsets = [0, 2], sizes = [8, 1], strides = [1, 1]} : vector<8x4xf32> to vector<8x1xf32>
    %28 = vector.extract_strided_slice %9 {offsets = [2, 0], sizes = [1, 16], strides = [1, 1]} : vector<4x16xf32> to vector<1x16xf32>
    %29 = vector.extract_strided_slice %8 {offsets = [0, 2], sizes = [8, 1], strides = [1, 1]} : vector<8x4xf32> to vector<8x1xf32>
    %30 = vector.broadcast %28 : vector<1x16xf32> to vector<8x16xf32>
    %31 = vector.broadcast %29 : vector<8x1xf32> to vector<8x16xf32>
    %32 = arith.mulf %30, %31 : vector<8x16xf32>
    %33 = vector.broadcast %27 : vector<8x1xf32> to vector<8x16xf32>
    %34 = arith.addf %33, %32 : vector<8x16xf32>
    %35 = arith.mulf %26, %34 : vector<8x16xf32>
    %36 = vector.extract_strided_slice %6 {offsets = [0, 3], sizes = [8, 1], strides = [1, 1]} : vector<8x4xf32> to vector<8x1xf32>
    %37 = vector.extract_strided_slice %9 {offsets = [3, 0], sizes = [1, 16], strides = [1, 1]} : vector<4x16xf32> to vector<1x16xf32>
    %38 = vector.extract_strided_slice %8 {offsets = [0, 3], sizes = [8, 1], strides = [1, 1]} : vector<8x4xf32> to vector<8x1xf32>
    %39 = vector.broadcast %37 : vector<1x16xf32> to vector<8x16xf32>
    %40 = vector.broadcast %38 : vector<8x1xf32> to vector<8x16xf32>
    %41 = arith.mulf %39, %40 : vector<8x16xf32>
    %42 = vector.broadcast %36 : vector<8x1xf32> to vector<8x16xf32>
    %43 = arith.addf %42, %41 : vector<8x16xf32>
    %44 = arith.mulf %35, %43 : vector<8x16xf32>
    %45 = arith.truncf %44 : vector<8x16xf32> to vector<8x16xbf16>
    %c0_7 = arith.constant 0 : index
    %c0_8 = arith.constant 0 : index
    %46 = vector.load %arg5[%c0_7, %c0_8] : memref<16x32xbf16, #tpu.memory_space<vmem>>, vector<16x32xbf16>
    %cst_9 = arith.constant dense<0.000000e+00> : vector<8x32xf32>
    %47 = tpu.matmul %45, %46, %cst_9 {dimension_numbers = #tpu.dot_dimension_numbers<[1], [0], [0], [1], [0, 0, 1, 1], [], []>} : vector<8x16xbf16>, vector<16x32xbf16>, vector<8x32xf32> -> vector<8x32xf32>
    %48 = vector.extract_strided_slice %47 {offsets = [0, 0], sizes = [8, 16], strides = [1, 1]} : vector<8x32xf32> to vector<8x16xf32>
    %49 = vector.extract_strided_slice %47 {offsets = [0, 16], sizes = [8, 16], strides = [1, 1]} : vector<8x32xf32> to vector<8x16xf32>
    %50 = arith.mulf %48, %48 : vector<8x16xf32>
    %51 = arith.mulf %49, %49 : vector<8x16xf32>
    %52 = arith.addf %50, %51 : vector<8x16xf32>
    %cst_10 = arith.constant 1.600000e+01 : f32
    %53 = vector.broadcast %cst_10 : f32 to vector<8x16xf32>
    %54 = arith.mulf %52, %53 : vector<8x16xf32>
    %cst_11 = arith.constant 0.000000e+00 : f32
    %cst_12 = arith.constant 1.000000e+00 : f32
    %55 = vector.broadcast %cst_11 : f32 to vector<8x16xf32>
    %56 = arith.maximumf %55, %54 : vector<8x16xf32>
    %57 = vector.broadcast %cst_12 : f32 to vector<8x16xf32>
    %58 = arith.minimumf %57, %56 : vector<8x16xf32>
    %c0_13 = arith.constant 0 : index
    %c0_14 = arith.constant 0 : index
    %59 = vector.load %arg6[%c0_13, %c0_14] : memref<8x16xf32, #tpu.memory_space<vmem>>, vector<8x16xf32>
    tpu.vector_store %arg6[%c0_13, %c0_14], %58 {strides = array<i32>} : memref<8x16xf32, #tpu.memory_space<vmem>>, vector<8x16xf32>,
    return
  }
  func.func @transform_0(%arg0: i32) -> (i32, i32) {
    %c0_i32 = arith.constant 0 : i32
    %c0_i32_0 = arith.constant 0 : i32
    return %arg0, %c0_i32 : i32, i32
  }
  func.func @transform_1(%arg0: i32) -> (i32, i32) {
    %c0_i32 = arith.constant 0 : i32
    %c0_i32_0 = arith.constant 0 : i32
    %c0_i32_1 = arith.constant 0 : i32
    return %c0_i32, %c0_i32_0 : i32, i32
  }
  func.func @transform_2(%arg0: i32) -> (i32, i32) {
    %c0_i32 = arith.constant 0 : i32
    %c0_i32_0 = arith.constant 0 : i32
    %c0_i32_1 = arith.constant 0 : i32
    return %c0_i32, %c0_i32_0 : i32, i32
  }
  func.func @transform_3(%arg0: i32) -> (i32, i32) {
    %c0_i32 = arith.constant 0 : i32
    %c0_i32_0 = arith.constant 0 : i32
    %c0_i32_1 = arith.constant 0 : i32
    return %c0_i32, %c0_i32_0 : i32, i32
  }
  func.func @transform_4(%arg0: i32) -> (i32, i32) {
    %c0_i32 = arith.constant 0 : i32
    %c0_i32_0 = arith.constant 0 : i32
    %c0_i32_1 = arith.constant 0 : i32
    return %c0_i32, %c0_i32_0 : i32, i32
  }
  func.func @transform_5(%arg0: i32) -> (i32, i32) {
    %c0_i32 = arith.constant 0 : i32
    %c0_i32_0 = arith.constant 0 : i32
    return %arg0, %c0_i32 : i32, i32
  }
}

module attributes {stable_mosaic.version = 11 : i64} {
  func.func @_qnn_kernel(%arg0: i32, %arg1: memref<8x16xf32, #tpu.memory_space<vmem>>, %arg2: memref<16x4xf32, #tpu.memory_space<vmem>>, %arg3: memref<1x4xf32, #tpu.memory_space<vmem>>, %arg4: memref<4x16xf32, #tpu.memory_space<vmem>>, %arg5: memref<16x32xbf16, #tpu.memory_space<vmem>>, %arg6: memref<8x16xf32, #tpu.memory_space<vmem>>) attributes {dimension_semantics = [#tpu.dimension_semantics<parallel>], iteration_bounds = array<i64: 1>, scalar_prefetch = 0 : i64, scratch_operands = 0 : i64, tpu.core_type = #tpu.core_type<tc>, window_params = [{transform_indices = @transform_0, window_bounds = array<i64: 8, 16>}, {pipeline_mode = #tpu.pipeline_mode<synchronous>, transform_indices = @transform_1, window_bounds = array<i64: 16, 4>}, {pipeline_mode = #tpu.pipeline_mode<synchronous>, transform_indices = @transform_2, window_bounds = array<i64: 1, 4>}, {pipeline_mode = #tpu.pipeline_mode<synchronous>, transform_indices = @transform_3, window_bounds = array<i64: 4, 16>}, {pipeline_mode = #tpu.pipeline_mode<synchronous>, transform_indices = @transform_4, window_bounds = array<i64: 16, 32>}, {transform_indices = @transform_5, window_bounds = array<i64: 8, 16>}]} {
    %c0 = arith.constant 0 : index
    %c0_0 = arith.constant 0 : index
    %0 = vector.load %arg1[%c0, %c0_0] : memref<8x16xf32, #tpu.memory_space<vmem>>, vector<8x16xf32>
    %c0_1 = arith.constant 0 : index
    %c0_2 = arith.constant 0 : index
    %1 = vector.load %arg2[%c0_1, %c0_2] : memref<16x4xf32, #tpu.memory_space<vmem>>, vector<16x4xf32>
    %cst = arith.constant dense<0.000000e+00> : vector<8x4xf32>
    %2 = tpu.matmul %0, %1, %cst {dimension_numbers = #tpu.dot_dimension_numbers<[1], [0], [0], [1], [0, 0, 1, 1], [], []>} : vector<8x16xf32>, vector<16x4xf32>, vector<8x4xf32> -> vector<8x4xf32>
    %c0_3 = arith.constant 0 : index
    %c0_4 = arith.constant 0 : index
    %3 = vector.load %arg3[%c0_3, %c0_4] : memref<1x4xf32, #tpu.memory_space<vmem>>, vector<1x4xf32>
    %4 = vector.broadcast %3 : vector<1x4xf32> to vector<8x4xf32>
    %5 = arith.addf %2, %4 : vector<8x4xf32>
    %6 = math.cos %5 : vector<8x4xf32>
    %7 = math.sin %5 : vector<8x4xf32>
    %8 = arith.subf %7, %6 : vector<8x4xf32>
    %c0_5 = arith.constant 0 : index
    %c0_6 = arith.constant 0 : index
    %9 = vector.load %arg4[%c0_5, %c0_6] : memref<4x16xf32, #tpu.memory_space<vmem>>, vector<4x16xf32>
    %10 = vector.extract_strided_slice %6 {offsets = [0, 0], sizes = [8, 1], strides = [1, 1]} : vector<8x4xf32> to vector<8x1xf32>
    %11 = vector.extract_strided_slice %9 {offsets = [0, 0], sizes = [1, 16], strides = [1, 1]} : vector<4x16xf32> to vector<1x16xf32>
    %12 = vector.extract_strided_slice %8 {offsets = [0, 0], sizes = [8, 1], strides = [1, 1]} : vector<8x4xf32> to vector<8x1xf32>
    %13 = vector.broadcast %11 : vector<1x16xf32> to vector<8x16xf32>
    %14 = vector.broadcast %12 : vector<8x1xf32> to vector<8x16xf32>
    %15 = arith.mulf %13, %14 : vector<8x16xf32>
    %16 = vector.broadcast %10 : vector<8x1xf32> to vector<8x16xf32>
    %17 = arith.addf %16, %15 : vector<8x16xf32>
    %18 = vector.extract_strided_slice %6 {offsets = [0, 1], sizes = [8, 1], strides = [1, 1]} : vector<8x4xf32> to vector<8x1xf32>
    %19 = vector.extract_strided_slice %9 {offsets = [1, 0], sizes = [1, 16], strides = [1, 1]} : vector<4x16xf32> to vector<1x16xf32>
    %20 = vector.extract_strided_slice %8 {offsets = [0, 1], sizes = [8, 1], strides = [1, 1]} : vector<8x4xf32> to vector<8x1xf32>
    %21 = vector.broadcast %19 : vector<1x16xf32> to vector<8x16xf32>
    %22 = vector.broadcast %20 : vector<8x1xf32> to vector<8x16xf32>
    %23 = arith.mulf %21, %22 : vector<8x16xf32>
    %24 = vector.broadcast %18 : vector<8x1xf32> to vector<8x16xf32>
    %25 = arith.addf %24, %23 : vector<8x16xf32>
    %26 = arith.mulf %17, %25 : vector<8x16xf32>
    %27 = vector.extract_strided_slice %6 {offsets = [0, 2], sizes = [8, 1], strides = [1, 1]} : vector<8x4xf32> to vector<8x1xf32>
    %28 = vector.extract_strided_slice %9 {offsets = [2, 0], sizes = [1, 16], strides = [1, 1]} : vector<4x16xf32> to vector<1x16xf32>
    %29 = vector.extract_strided_slice %8 {offsets = [0, 2], sizes = [8, 1], strides = [1, 1]} : vector<8x4xf32> to vector<8x1xf32>
    %30 = vector.broadcast %28 : vector<1x16xf32> to vector<8x16xf32>
    %31 = vector.broadcast %29 : vector<8x1xf32> to vector<8x16xf32>
    %32 = arith.mulf %30, %31 : vector<8x16xf32>
    %33 = vector.broadcast %27 : vector<8x1xf32> to vector<8x16xf32>
    %34 = arith.addf %33, %32 : vector<8x16xf32>
    %35 = arith.mulf %26, %34 : vector<8x16xf32>
    %36 = vector.extract_strided_slice %6 {offsets = [0, 3], sizes = [8, 1], strides = [1, 1]} : vector<8x4xf32> to vector<8x1xf32>
    %37 = vector.extract_strided_slice %9 {offsets = [3, 0], sizes = [1, 16], strides = [1, 1]} : vector<4x16xf32> to vector<1x16xf32>
    %38 = vector.extract_strided_slice %8 {offsets = [0, 3], sizes = [8, 1], strides = [1, 1]} : vector<8x4xf32> to vector<8x1xf32>
    %39 = vector.broadcast %37 : vector<1x16xf32> to vector<8x16xf32>
    %40 = vector.broadcast %38 : vector<8x1xf32> to vector<8x16xf32>
    %41 = arith.mulf %39, %40 : vector<8x16xf32>
    %42 = vector.broadcast %36 : vector<8x1xf32> to vector<8x16xf32>
    %43 = arith.addf %42, %41 : vector<8x16xf32>
    %44 = arith.mulf %35, %43 : vector<8x16xf32>
    %45 = arith.truncf %44 : vector<8x16xf32> to vector<8x16xbf16>
    %c0_7 = arith.constant 0 : index
    %c0_8 = arith.constant 0 : index
    %46 = vector.load %arg5[%c0_7, %c0_8] : memref<16x32xbf16, #tpu.memory_space<vmem>>, vector<16x32xbf16>
    %cst_9 = arith.constant dense<0.000000e+00> : vector<8x32xf32>
    %47 = tpu.matmul %45, %46, %cst_9 {dimension_numbers = #tpu.dot_dimension_numbers<[1], [0], [0], [1], [0, 0, 1, 1], [], []>} : vector<8x16xbf16>, vector<16x32xbf16>, vector<8x32xf32> -> vector<8x32xf32>
    %48 = vector.extract_strided_slice %47 {offsets = [0, 0], sizes = [8, 16], strides = [1, 1]} : vector<8x32xf32> to vector<8x16xf32>
    %49 = vector.extract_strided_slice %47 {offsets = [0, 16], sizes = [8, 16], strides = [1, 1]} : vector<8x32xf32> to vector<8x16xf32>
    %50 = arith.mulf %48, %48 : vector<8x16xf32>
    %51 = arith.mulf %49, %49 : vector<8x16xf32>
    %52 = arith.addf %50, %51 : vector<8x16xf32>
    %cst_10 = arith.constant 1.600000e+01 : f32
    %53 = vector.broadcast %cst_10 : f32 to vector<8x16xf32>
    %54 = arith.mulf %52, %53 : vector<8x16xf32>
    %cst_11 = arith.constant 0.000000e+00 : f32
    %cst_12 = arith.constant 1.000000e+00 : f32
    %55 = vector.broadcast %cst_11 : f32 to vector<8x16xf32>
    %56 = arith.maximumf %55, %54 : vector<8x16xf32>
    %57 = vector.broadcast %cst_12 : f32 to vector<8x16xf32>
    %58 = arith.minimumf %57, %56 : vector<8x16xf32>
    %c0_13 = arith.constant 0 : index
    %c0_14 = arith.constant 0 : index
    %59 = vector.load %arg6[%c0_13, %c0_14] : memref<8x16xf32, #tpu.memory_space<vmem>>, vector<8x16xf32>
    tpu.vector_store %arg6[%c0_13, %c0_14], %58 {strides = array<i32>} : memref<8x16xf32, #tpu.memory_space<vmem>>, vector<8x16xf32>,
    return
  }
  func.func @transform_0(%arg0: i32) -> (i32, i32) {
    %c0_i32 = arith.constant 0 : i32
    %c0_i32_0 = arith.constant 0 : i32
    return %arg0, %c0_i32 : i32, i32
  }
  func.func @transform_1(%arg0: i32) -> (i32, i32) {
    %c0_i32 = arith.constant 0 : i32
    %c0_i32_0 = arith.constant 0 : i32
    %c0_i32_1 = arith.constant 0 : i32
    return %c0_i32, %c0_i32_0 : i32, i32
  }
  func.func @transform_2(%arg0: i32) -> (i32, i32) {
    %c0_i32 = arith.constant 0 : i32
    %c0_i32_0 = arith.constant 0 : i32
    %c0_i32_1 = arith.constant 0 : i32
    return %c0_i32, %c0_i32_0 : i32, i32
  }
  func.func @transform_3(%arg0: i32) -> (i32, i32) {
    %c0_i32 = arith.constant 0 : i32
    %c0_i32_0 = arith.constant 0 : i32
    %c0_i32_1 = arith.constant 0 : i32
    return %c0_i32, %c0_i32_0 : i32, i32
  }
  func.func @transform_4(%arg0: i32) -> (i32, i32) {
    %c0_i32 = arith.constant 0 : i32
    %c0_i32_0 = arith.constant 0 : i32
    %c0_i32_1 = arith.constant 0 : i32
    return %c0_i32, %c0_i32_0 : i32, i32
  }
  func.func @transform_5(%arg0: i32) -> (i32, i32) {
    %c0_i32 = arith.constant 0 : i32
    %c0_i32_0 = arith.constant 0 : i32
    return %arg0, %c0_i32 : i32, i32
  }
}

</mosaic_0001>

<bundles_post_ra>
// kernel: tpu_custom_call.1
= control target key start
LH: loop header
LB: loop body
LE: loop exit
PB: predicated region body
PF: predicated region fallthrough
CT: control target
= control target key end

     0   :  { %v541_v2 = vmov 0.0|0.0   ;;  %vm542_vm0 = vmmov 0   ;;  %v543_v4 = vmov 0.0   ;;  %s640_s0 = inlined_call_operand.vmem [shape: f32[8,16], index: 0, kind: input, shape index: {}]   ;;  %s641_s1 = inlined_call_operand.vmem [shape: f32[16,4], index: 1, kind: input, shape index: {}]   ;;  %s642_s2 = inlined_call_operand.vmem [shape: f32[1,4], index: 2, kind: input, shape index: {}]   ;;  %s643_s3 = inlined_call_operand.vmem [shape: f32[4,16], index: 3, kind: input, shape index: {}]   ;;  %s644_s4 = inlined_call_operand.vmem [shape: bf16[16,32], index: 4, kind: input, shape index: {}]   ;;  %s645_s5 = inlined_call_operand.hbm [shape: f32[8,16], index: 5, kind: output, shape index: {}]  }
   0x1   :  { %v23_v0 = vld [vmem:[%s641_s1] sm:$0xff]  ;;  %v24_v1 = vld [vmem:[%s641_s1 + $0x8] sm:$0xff]  ;;  %482 = vmatprep.subr.bf16.mxu0 %v541_v2  ;;  %473 = vmatprep.mubr.msk.f32.mxu0 %vm542_vm0, %v543_v4 }
   0x2   :  { %v483_v3 = vpack.c.bf16 %v24_v1, %v23_v0  ;;  %476 = vmatprep.subr.bf16.mxu1 %v543_v4  ;;  %478 = vmatprep.mubr.msk.bf16.mxu1 %vm542_vm0, %v543_v4 }
   0x3   :  { %10 = vsyncpa [#allocation3], 0  ;;  %v22_v5 = vld [vmem:[%s640_s0] sm:$0xff]  ;;  %vm32_vm1 = vcmask 130048   ;;  %v544_v6 = vmov 0  }
   0x4   :  { %484 = vmatpush3.bf16.msra.mxu0 %v483_v3  ;;  %504 = vset.pattern.permute.xlu1 %v544_v6  ;;  %v452_v7 = vld [vmem:[%s642_s2] ss:$0 sm:$0xff]  ;;  %v545_v21 = vmov 683565275   ;;  %v546_v23 = vmov 2475754826  }
   0x5   :  { %506 = vset.pattern.permute.xlu0 %v544_v6  ;;  %v547_v26 = vmov 2131351028   ;;  %v548_v29 = vmov 2102212464   ;;  %v549_v32 = vmov 920167782  }
   0x6   :  { %v550_v35 = vmov 1326507024  }
   0x7   :  { %474 = vmatmul.mubr.msk.f32.vlgmr.msra.gmra.mrb[0].mxu0 %vm32_vm1, %v22_v5 }
  0xda   :  { %v102_v8 = vpop.f32.mrb[0].mxu0 }
  0xdb   :  { %v599_v9 = vadd.f32 %v452_v7, %v102_v8  ;;  %v475_v10 = vpop.f32.mrb[1].mxu0 }
  0xdd   :  { %v109_v11 = vand.u32 2139095040, %v599_v9  ;;  %v106_v15 = vand.u32 2147483647, %v599_v9  ;;  %vm108_vm9 = vcmp.lt.s32.totalorder %v599_v9, 0 }
  0xdf   :  { %v110_v12 = vshrl.u32 %v109_v11, 23  ;;  %v113_v18 = vand.u32 8388607, %v106_v15  ;;  %vm107_vm10 = vcmp.le.f32.partialorder %v106_v15, 0.7853982 }
  0xe1   :  { %v454_v13 = vadd.s32 4294967169, %v110_v12  ;;  %v114_v37 = vor.u32 8388608, %v113_v18 }
  0xe3   :  { %v116_v14 = vadd.s32 1, %v454_v13  ;;  %v154_v51 = vshll.u32 %v114_v37, 8 }
  0xe5   :  { %vm117_vm2 = vcmp.gt.s32.totalorder %v116_v14, 0 }
  0xe6   :  { %v118_v16 = vsel %vm117_vm2, %v116_v14, 0  ;;  %vm198_vm2 = vweird.f32 %v599_v9 }
  0xe7   :  { %v120_v17 = vand.u32 31, %v118_v16  ;;  %v119_v20 = vshrl.u32 %v118_v16, 5 }
  0xe9   :  { %v121_v19 = vsub.s32 32, %v120_v17  ;;  %v123_v22 = vshll.u32 %v545_v21, %v120_v17  ;;  %v126_v24 = vshll.u32 %v546_v23, %v120_v17  ;;  %v129_v28 = vshll.u32 %v547_v26, %v120_v17 }
  0xea   :  { %v132_v31 = vshll.u32 %v548_v29, %v120_v17  ;;  %v135_v34 = vshll.u32 %v549_v32, %v120_v17  ;;  %vm138_vm3 = vcmp.lt.s32.totalorder %v119_v20, 1  ;;  %vm141_vm4 = vcmp.lt.s32.totalorder %v119_v20, 4 }
  0xeb   :  { %v124_v25 = vshrl.u32 %v546_v23, %v121_v19  ;;  %v127_v27 = vshrl.u32 %v547_v26, %v121_v19  ;;  %v130_v30 = vshrl.u32 %v548_v29, %v121_v19  ;;  %v133_v33 = vshrl.u32 %v549_v32, %v121_v19 }
  0xec   :  { %v136_v36 = vshrl.u32 %v550_v35, %v121_v19  ;;  %v122_v46 = vshrl.u32 %v545_v21, %v121_v19  ;;  %vm140_vm5 = vcmp.lt.s32.totalorder %v119_v20, 3  ;;  %vm139_vm6 = vcmp.lt.s32.totalorder %v119_v20, 2 }
  0xed   :  { %v125_v38 = vor.u32 %v124_v25, %v123_v22  ;;  %v128_v39 = vor.u32 %v127_v27, %v126_v24  ;;  %v131_v40 = vor.u32 %v130_v30, %v129_v28  ;;  %v134_v41 = vor.u32 %v133_v33, %v132_v31 }
  0xee   :  { %v137_v42 = vor.u32 %v136_v36, %v135_v34 }
  0xef   :  { %v143_v43 = vsel %vm141_vm4, %v131_v40, 2102212464  ;;  %v146_v44 = vsel %vm138_vm3, %v125_v38, %v128_v39  ;;  %v150_v45 = vsel %vm138_vm3, %v128_v39, %v131_v40  ;;  %v147_v47 = vsel %vm141_vm4, %v134_v41, 920167782 }
  0xf0   :  { %v151_v48 = vsel %vm141_vm4, %v137_v42, 1326507024  ;;  %v148_v49 = vsel %vm140_vm5, %v131_v40, %v147_v47  ;;  %v142_v52 = vsel %vm138_vm3, %v122_v46, %v125_v38  ;;  %v144_v53 = vsel %vm140_vm5, %v128_v39, %v143_v43 }
  0xf1   :  { %v152_v50 = vsel %vm140_vm5, %v134_v41, %v151_v48  ;;  %v149_v54 = vsel %vm139_vm6, %v146_v44, %v148_v49  ;;  %v145_v60 = vsel %vm139_vm6, %v142_v52, %v144_v53  ;;  %v552_v46 = vmov 2  }
  0xf2   :  { %v153_v55 = vsel %vm139_vm6, %v150_v45, %v152_v50  ;;  %v608_v58 = vmul.u32.u64.low %v154_v51, %v149_v54  ;;  %v609_v59 = vmul.u32.u64.high %v154_v51, %v149_v54, %v608_v58  ;;  %v161_v62 = vmul.u32 %v154_v51, %v145_v60  ;;  %v314_v54 = vld [vmem:[%s643_s3] sm:$0xf]  ;;  %s554_s3 = smov 112  }
  0xf3   :  { %v605_v56 = vmul.u32.u64.low %v154_v51, %v153_v55  ;;  %v606_v57 = vmul.u32.u64.high %v154_v51, %v153_v55, %v605_v56  ;;  %v551_v45 = vmov 1   ;;  %v553_v47 = vmov 3  }
  0xf4   :  { %v164_v61 = vadd.s32 1, %v609_v59  ;;  %v315_v48 = vlaneseq }
  0xf5   :  { %vm163_vm7 = vc.u32 %v606_v57, %v608_v58  ;;  %v162_v11 = vadd.s32 %v608_v58, %v606_v57 }
  0xf6   :  { %v165_v63 = vsel %vm163_vm7, %v164_v61, %v609_v59  ;;  %v316_v49 = vshrl.u32 %v315_v48, 7 }
  0xf7   :  { %v166_v0 = vadd.s32 %v165_v63, %v161_v62 }
  0xf8   :  { %v333_v51 = vsub.s32 1, %v316_v49  ;;  %v317_v52 = vsub.s32 0, %v316_v49  ;;  %v348_v56 = vsub.s32 2, %v316_v49 }
  0xf9   :  { %v167_v1 = vadd.s32 536870912, %v166_v0 }
  0xfa   :  { %v334_v55 = vrot.slane %v314_v54, %v333_v51  ;;  %v318_v58 = vrot.slane %v314_v54, %v317_v52  ;;  %v349_v61 = vrot.slane %v314_v54, %v348_v56 }
  0xfb   :  { %v168_v2 = vshrl.u32 %v167_v1, 30 }
  0xfd   :  { %v169_v3 = vshll.u32 %v168_v2, 30  ;;  %v192_v24 = vsub.s32 4, %v168_v2 }
  0xff   :  { %v170_v4 = vsub.s32 %v166_v0, %v169_v3  ;;  %v193_v27 = vsel %vm108_vm9, %v192_v24, %v168_v2  ;;  %v363_v0 = vsub.s32 3, %v316_v49 }
 0x100   :  { %v195_v29 = vsel %vm107_vm10, 0, %v193_v27 }
 0x101   :  { %v172_v5 = vsub.s32 0, %v170_v4  ;;  %v302_v30 = vadd.s32 3, %v195_v29  ;;  %v199_v31 = vand.u32 3, %v195_v29 }
 0x103   :  { %v455_v6 = vmin.u32 %v172_v5, %v170_v4  ;;  %v303_v32 = vand.u32 3, %v302_v30  ;;  %vm204_vm11 = vcmp.eq.s32.totalorder %v199_v31, 2  ;;  %vm201_vm13 = vcmp.eq.s32.totalorder %v199_v31, 0 }
 0x104   :  { %vm200_vm15 = vcmp.lt.s32.totalorder %v199_v31, 2  ;;  %v364_v5 = vrot.slane %v314_v54, %v363_v0 }
 0x105   :  { %v174_v7 = vclz %v455_v6  ;;  %vm308_vm12 = vcmp.eq.s32.totalorder %v303_v32, 2  ;;  %vm305_vm14 = vcmp.eq.s32.totalorder %v303_v32, 0  ;;  %vm304_vm0 = vcmp.lt.s32.totalorder %v303_v32, 2 }
 0x107   :  { %v456_v8 = vadd.s32 4294967294, %v174_v7 }
 0x109   :  { %vm457_vm8 = vcmp.lt.s32.totalorder %v456_v8, 0 }
 0x10a   :  { %v177_v10 = vsel %vm457_vm8, 0, %v456_v8 }
 0x10b   :  { %v178_v12 = vsub.s32 32, %v177_v10  ;;  %v182_v13 = vsub.s32 4294967266, %v177_v10  ;;  %v179_v14 = vshll.u32 %v170_v4, %v177_v10 }
 0x10d   :  { %v180_v16 = vshrl.u32 %v162_v11, %v178_v12  ;;  %v183_v17 = vadd.s32 127, %v182_v13 }
 0x10f   :  { %v181_v18 = vor.u32 %v180_v16, %v179_v14  ;;  %v184_v19 = vshll.u32 %v183_v17, 23 }
 0x111   :  { %v185_v20 = vor.u32 4788187, %v184_v19  ;;  %v188_v22 = vcvt.s32.f32 %v181_v18 }
 0x113   :  { %v186_v21 = vand.u32 2147483647, %v185_v20 }
 0x115   :  { %v189_v23 = vmul.f32 %v188_v22, %v186_v21 }
 0x117   :  { %v190_v25 = vxor.u32 2147483648, %v189_v23 }
 0x119   :  { %v191_v26 = vsel %vm108_vm9, %v190_v25, %v189_v23 }
 0x11a   :  { %v194_v28 = vsel %vm107_vm10, %v599_v9, %v191_v26  ;;  %v512_v9 = vld [vmem:[%s644_s4] sm:$0xff]   ;;  %s555_s4 = smov [#allocation2]  }
 0x11b   :  { %513 = vcosq.f32 %v194_v28  ;;  %477 = vmatpush3.bf16.msra.mxu1 %v512_v9  ;;  %s444_s27 = sshll.u32 %s555_s4, 4  ;;  %s445_s27 = int_to_ptr.vmem [resolvable:$true] %s444_s27 }
 0x11c   :  { %515 = vsinq.f32 %v194_v28  ;;  %s517_s28 = scalar_lea.vmem %s445_s27, 128  ;;  %p522_p1 = scmp.lt.s32.totalorder %s445_s27, %s445_s27 }
 0x11d   :  { %p518_p0 = scmp.ne.s32.totalorder %s445_s27, %s517_s28  ;;  %p523_p2 = scmp.lt.s32.totalorder %s517_s28, %s517_s28 }
 0x11f   :  { %p524_p3 = por %p523_p2, %p522_p1 }
 0x121   :  { %p525_p4 = pnand %p524_p3, %p518_p0 }
 0x125   :  { %v514_v33 = vpop.eup %513 }
 0x126   :  { %v516_v34 = vpop.eup %515  ;;  %v205_v35 = vxor.u32 2147483648, %v514_v33 }
 0x127   :  { %v202_v36 = vxor.u32 2147483648, %v516_v34 }
 0x128   :  { %v206_v37 = vsel %vm204_vm11, %v205_v35, %v516_v34  ;;  %v310_v15 = vsel %vm308_vm12, %v205_v35, %v516_v34 }
 0x129   :  { %v203_v38 = vsel %vm201_vm13, %v514_v33, %v202_v36  ;;  %v307_v39 = vsel %vm305_vm14, %v514_v33, %v202_v36 }
 0x12a   :  { %v207_v40 = vsel %vm200_vm15, %v203_v38, %v206_v37  ;;  %v311_v41 = vsel %vm304_vm0, %v307_v39, %v310_v15 }
 0x12b   :  { %v208_v42 = vsel %vm198_vm2, nan, %v207_v40  ;;  %v312_v43 = vsel %vm198_vm2, nan, %v311_v41 }
 0x12c   :  { %327 = vperm.xlu1 %504, %v208_v42   ;;  %v313_v44 = vsub.f32 %v312_v43, %v208_v42 }
 0x12e   :  { %321 = vperm.xlu0 %506, %v313_v44  }
 0x130   :  { %505 = vset.pattern.permute.xlu1 %v551_v45 }
 0x131   :  { %341 = vperm.xlu1 %505, %v208_v42  }
 0x132   :  { %507 = vset.pattern.permute.xlu0 %v551_v45 }
 0x133   :  { %336 = vperm.xlu0 %507, %v313_v44  }
 0x135   :  { %509 = vset.pattern.permute.xlu1 %v552_v46 }
 0x136   :  { %351 = vperm.xlu1 %509, %v313_v44  }
 0x137   :  { %508 = vset.pattern.permute.xlu0 %v552_v46 }
 0x138   :  { %356 = vperm.xlu0 %508, %v208_v42  }
 0x13a   :  { %510 = vset.pattern.permute.xlu1 %v553_v47 }
 0x13b   :  { %366 = vperm.xlu1 %510, %v313_v44  }
 0x13c   :  { %511 = vset.pattern.permute.xlu0 %v553_v47 }
 0x13f   :  { %371 = vperm.xlu1 %510, %v208_v42  }
 0x1ab   :  { %v328_v50 = vpop.permute.xlu1 %327 }
 0x1ad   :  { %v322_v53 = vpop.permute.xlu0 %321 }
 0x1ae   :  { %v324_v62 = vmul.f32 %v322_v53, %v318_v58 }
 0x1b0   :  { %v342_v57 = vpop.permute.xlu1 %341  ;;  %v330_v4 = vadd.f32 %v328_v50, %v324_v62 }
 0x1b2   :  { %v337_v59 = vpop.permute.xlu0 %336 }
 0x1b3   :  { %v339_v60 = vmul.f32 %v337_v59, %v334_v55 }
 0x1b5   :  { %v352_v63 = vpop.permute.xlu1 %351  ;;  %v344_v1 = vadd.f32 %v342_v57, %v339_v60 }
 0x1b6   :  { %v354_v2 = vmul.f32 %v352_v63, %v349_v61 }
 0x1b7   :  { %v357_v3 = vpop.permute.xlu0 %356  ;;  %v345_v7 = vmul.f32 %v344_v1, %v330_v4 }
 0x1b8   :  { %v359_v8 = vadd.f32 %v357_v3, %v354_v2 }
 0x1ba   :  { %v367_v6 = vpop.permute.xlu1 %366  ;;  %v360_v12 = vmul.f32 %v359_v8, %v345_v7 }
 0x1bb   :  { %v369_v10 = vmul.f32 %v367_v6, %v364_v5 }
 0x1be   :  { %v372_v11 = vpop.permute.xlu1 %371 }
 0x1bf   :  { %v374_v13 = vadd.f32 %v372_v11, %v369_v10 }
 0x1c1   :  { %v375_v14 = vmul.f32 %v374_v13, %v360_v12 }
 0x1c3   :  { %v376_v16 = vpack.c.bf16 %v375_v14, %v375_v14 }
 0x1c5   :  { %479 = vmatmul.mubr.msk.bf16.vlgmr.msra.gmra.mrb[0].mxu1 %vm32_vm1, %v376_v16 }
 0x298   :  { %v422_v17 = vpop.f32.mrb[0].mxu1 }
 0x299   :  { %v428_v18 = vmul.f32 %v422_v17, %v422_v17  ;;  %v480_v19 = vpop.f32.mrb[1].mxu1 }
 0x29a   :  { %v425_v20 = vpop.f32.mrb[2].mxu1 }
 0x29b   :  { %430 = vrot.lane.b32.xlu0 %v428_v18, %s554_s3  ;;  %v481_v21 = vpop.f32.mrb[3].mxu1 }
 0x30d   :  { %v431_v22 = vpop.permute.xlu0 %430 }
 0x30e   :  { %v433_v23 = vadd.f32 %v431_v22, %v428_v18 }
 0x310   :  { %v434_v24 = vmul.f32 16.0, %v433_v23 }
 0x312   :  { %v435_v25 = vmax.f32 %v434_v24, 0.0 }
 0x314   :  { %v436_v26 = vmin.f32 %v435_v25, 1.0 }
 0x316   :  { %437 = vst.msk [vmem:[#allocation2] sm:$0xff] %vm32_vm1, %v436_v26 }
 0x317   :  { %528 = shalt.err (!%p525_p4)
}
 0x318   :  { %s529_s6 = scalar_lea.hbm %s645_s5, 128 }
 0x319   :  { %p530_p5 = scmp.ne.s32.totalorder %s645_s5, %s529_s6  ;;  %p533_p6 = scmp.lt.u32.totalorder %s529_s6, %s645_s5 }
 0x31b   :  { %p535_p7 = pnand %p533_p6, %p530_p5 }
 0x31d   :  { %538 = shalt.err (!%p535_p7)
}
 0x31e   :  { %447 = dma.vmem_to_hbm [thread:$0]  %s445_s27, 128, %s645_s5, [#allocation3]  }
 0x31f   :  { %539 = dma.done.wait [#allocation3], 128  }
 0x320   :  { %540 = vsyncadd [#allocation3], 4294967168 }
 0x321   :  { %451 = vsyncpa [#allocation3], 1 }

// kernel: tpu_custom_call.1
= control target key start
LH: loop header
LB: loop body
LE: loop exit
PB: predicated region body
PF: predicated region fallthrough
CT: control target
= control target key end

     0   :  { %v541_v2 = vmov 0.0|0.0   ;;  %vm542_vm0 = vmmov 0   ;;  %v543_v4 = vmov 0.0   ;;  %s640_s0 = inlined_call_operand.vmem [shape: f32[8,16], index: 0, kind: input, shape index: {}]   ;;  %s641_s1 = inlined_call_operand.vmem [shape: f32[16,4], index: 1, kind: input, shape index: {}]   ;;  %s642_s2 = inlined_call_operand.vmem [shape: f32[1,4], index: 2, kind: input, shape index: {}]   ;;  %s643_s3 = inlined_call_operand.vmem [shape: f32[4,16], index: 3, kind: input, shape index: {}]   ;;  %s644_s4 = inlined_call_operand.vmem [shape: bf16[16,32], index: 4, kind: input, shape index: {}]   ;;  %s645_s5 = inlined_call_operand.hbm [shape: f32[8,16], index: 5, kind: output, shape index: {}]  }
   0x1   :  { %v23_v0 = vld [vmem:[%s641_s1] sm:$0xff]  ;;  %v24_v1 = vld [vmem:[%s641_s1 + $0x8] sm:$0xff]  ;;  %482 = vmatprep.subr.bf16.mxu0 %v541_v2  ;;  %473 = vmatprep.mubr.msk.f32.mxu0 %vm542_vm0, %v543_v4 }
   0x2   :  { %v483_v3 = vpack.c.bf16 %v24_v1, %v23_v0  ;;  %476 = vmatprep.subr.bf16.mxu1 %v543_v4  ;;  %478 = vmatprep.mubr.msk.bf16.mxu1 %vm542_vm0, %v543_v4 }
   0x3   :  { %10 = vsyncpa [#allocation3], 0  ;;  %v22_v5 = vld [vmem:[%s640_s0] sm:$0xff]  ;;  %vm32_vm1 = vcmask 130048   ;;  %v544_v6 = vmov 0  }
   0x4   :  { %484 = vmatpush3.bf16.msra.mxu0 %v483_v3  ;;  %504 = vset.pattern.permute.xlu1 %v544_v6  ;;  %v452_v7 = vld [vmem:[%s642_s2] ss:$0 sm:$0xff]  ;;  %v545_v21 = vmov 683565275   ;;  %v546_v23 = vmov 2475754826  }
   0x5   :  { %506 = vset.pattern.permute.xlu0 %v544_v6  ;;  %v547_v26 = vmov 2131351028   ;;  %v548_v29 = vmov 2102212464   ;;  %v549_v32 = vmov 920167782  }
   0x6   :  { %v550_v35 = vmov 1326507024  }
   0x7   :  { %474 = vmatmul.mubr.msk.f32.vlgmr.msra.gmra.mrb[0].mxu0 %vm32_vm1, %v22_v5 }
  0xda   :  { %v102_v8 = vpop.f32.mrb[0].mxu0 }
  0xdb   :  { %v599_v9 = vadd.f32 %v452_v7, %v102_v8  ;;  %v475_v10 = vpop.f32.mrb[1].mxu0 }
  0xdd   :  { %v109_v11 = vand.u32 2139095040, %v599_v9  ;;  %v106_v15 = vand.u32 2147483647, %v599_v9  ;;  %vm108_vm9 = vcmp.lt.s32.totalorder %v599_v9, 0 }
  0xdf   :  { %v110_v12 = vshrl.u32 %v109_v11, 23  ;;  %v113_v18 = vand.u32 8388607, %v106_v15  ;;  %vm107_vm10 = vcmp.le.f32.partialorder %v106_v15, 0.7853982 }
  0xe1   :  { %v454_v13 = vadd.s32 4294967169, %v110_v12  ;;  %v114_v37 = vor.u32 8388608, %v113_v18 }
  0xe3   :  { %v116_v14 = vadd.s32 1, %v454_v13  ;;  %v154_v51 = vshll.u32 %v114_v37, 8 }
  0xe5   :  { %vm117_vm2 = vcmp.gt.s32.totalorder %v116_v14, 0 }
  0xe6   :  { %v118_v16 = vsel %vm117_vm2, %v116_v14, 0  ;;  %vm198_vm2 = vweird.f32 %v599_v9 }
  0xe7   :  { %v120_v17 = vand.u32 31, %v118_v16  ;;  %v119_v20 = vshrl.u32 %v118_v16, 5 }
  0xe9   :  { %v121_v19 = vsub.s32 32, %v120_v17  ;;  %v123_v22 = vshll.u32 %v545_v21, %v120_v17  ;;  %v126_v24 = vshll.u32 %v546_v23, %v120_v17  ;;  %v129_v28 = vshll.u32 %v547_v26, %v120_v17 }
  0xea   :  { %v132_v31 = vshll.u32 %v548_v29, %v120_v17  ;;  %v135_v34 = vshll.u32 %v549_v32, %v120_v17  ;;  %vm138_vm3 = vcmp.lt.s32.totalorder %v119_v20, 1  ;;  %vm141_vm4 = vcmp.lt.s32.totalorder %v119_v20, 4 }
  0xeb   :  { %v124_v25 = vshrl.u32 %v546_v23, %v121_v19  ;;  %v127_v27 = vshrl.u32 %v547_v26, %v121_v19  ;;  %v130_v30 = vshrl.u32 %v548_v29, %v121_v19  ;;  %v133_v33 = vshrl.u32 %v549_v32, %v121_v19 }
  0xec   :  { %v136_v36 = vshrl.u32 %v550_v35, %v121_v19  ;;  %v122_v46 = vshrl.u32 %v545_v21, %v121_v19  ;;  %vm140_vm5 = vcmp.lt.s32.totalorder %v119_v20, 3  ;;  %vm139_vm6 = vcmp.lt.s32.totalorder %v119_v20, 2 }
  0xed   :  { %v125_v38 = vor.u32 %v124_v25, %v123_v22  ;;  %v128_v39 = vor.u32 %v127_v27, %v126_v24  ;;  %v131_v40 = vor.u32 %v130_v30, %v129_v28  ;;  %v134_v41 = vor.u32 %v133_v33, %v132_v31 }
  0xee   :  { %v137_v42 = vor.u32 %v136_v36, %v135_v34 }
  0xef   :  { %v143_v43 = vsel %vm141_vm4, %v131_v40, 2102212464  ;;  %v146_v44 = vsel %vm138_vm3, %v125_v38, %v128_v39  ;;  %v150_v45 = vsel %vm138_vm3, %v128_v39, %v131_v40  ;;  %v147_v47 = vsel %vm141_vm4, %v134_v41, 920167782 }
  0xf0   :  { %v151_v48 = vsel %vm141_vm4, %v137_v42, 1326507024  ;;  %v148_v49 = vsel %vm140_vm5, %v131_v40, %v147_v47  ;;  %v142_v52 = vsel %vm138_vm3, %v122_v46, %v125_v38  ;;  %v144_v53 = vsel %vm140_vm5, %v128_v39, %v143_v43 }
  0xf1   :  { %v152_v50 = vsel %vm140_vm5, %v134_v41, %v151_v48  ;;  %v149_v54 = vsel %vm139_vm6, %v146_v44, %v148_v49  ;;  %v145_v60 = vsel %vm139_vm6, %v142_v52, %v144_v53  ;;  %v552_v46 = vmov 2  }
  0xf2   :  { %v153_v55 = vsel %vm139_vm6, %v150_v45, %v152_v50  ;;  %v608_v58 = vmul.u32.u64.low %v154_v51, %v149_v54  ;;  %v609_v59 = vmul.u32.u64.high %v154_v51, %v149_v54, %v608_v58  ;;  %v161_v62 = vmul.u32 %v154_v51, %v145_v60  ;;  %v314_v54 = vld [vmem:[%s643_s3] sm:$0xf]  ;;  %s554_s3 = smov 112  }
  0xf3   :  { %v605_v56 = vmul.u32.u64.low %v154_v51, %v153_v55  ;;  %v606_v57 = vmul.u32.u64.high %v154_v51, %v153_v55, %v605_v56  ;;  %v551_v45 = vmov 1   ;;  %v553_v47 = vmov 3  }
  0xf4   :  { %v164_v61 = vadd.s32 1, %v609_v59  ;;  %v315_v48 = vlaneseq }
  0xf5   :  { %vm163_vm7 = vc.u32 %v606_v57, %v608_v58  ;;  %v162_v11 = vadd.s32 %v608_v58, %v606_v57 }
  0xf6   :  { %v165_v63 = vsel %vm163_vm7, %v164_v61, %v609_v59  ;;  %v316_v49 = vshrl.u32 %v315_v48, 7 }
  0xf7   :  { %v166_v0 = vadd.s32 %v165_v63, %v161_v62 }
  0xf8   :  { %v333_v51 = vsub.s32 1, %v316_v49  ;;  %v317_v52 = vsub.s32 0, %v316_v49  ;;  %v348_v56 = vsub.s32 2, %v316_v49 }
  0xf9   :  { %v167_v1 = vadd.s32 536870912, %v166_v0 }
  0xfa   :  { %v334_v55 = vrot.slane %v314_v54, %v333_v51  ;;  %v318_v58 = vrot.slane %v314_v54, %v317_v52  ;;  %v349_v61 = vrot.slane %v314_v54, %v348_v56 }
  0xfb   :  { %v168_v2 = vshrl.u32 %v167_v1, 30 }
  0xfd   :  { %v169_v3 = vshll.u32 %v168_v2, 30  ;;  %v192_v24 = vsub.s32 4, %v168_v2 }
  0xff   :  { %v170_v4 = vsub.s32 %v166_v0, %v169_v3  ;;  %v193_v27 = vsel %vm108_vm9, %v192_v24, %v168_v2  ;;  %v363_v0 = vsub.s32 3, %v316_v49 }
 0x100   :  { %v195_v29 = vsel %vm107_vm10, 0, %v193_v27 }
 0x101   :  { %v172_v5 = vsub.s32 0, %v170_v4  ;;  %v302_v30 = vadd.s32 3, %v195_v29  ;;  %v199_v31 = vand.u32 3, %v195_v29 }
 0x103   :  { %v455_v6 = vmin.u32 %v172_v5, %v170_v4  ;;  %v303_v32 = vand.u32 3, %v302_v30  ;;  %vm204_vm11 = vcmp.eq.s32.totalorder %v199_v31, 2  ;;  %vm201_vm13 = vcmp.eq.s32.totalorder %v199_v31, 0 }
 0x104   :  { %vm200_vm15 = vcmp.lt.s32.totalorder %v199_v31, 2  ;;  %v364_v5 = vrot.slane %v314_v54, %v363_v0 }
 0x105   :  { %v174_v7 = vclz %v455_v6  ;;  %vm308_vm12 = vcmp.eq.s32.totalorder %v303_v32, 2  ;;  %vm305_vm14 = vcmp.eq.s32.totalorder %v303_v32, 0  ;;  %vm304_vm0 = vcmp.lt.s32.totalorder %v303_v32, 2 }
 0x107   :  { %v456_v8 = vadd.s32 4294967294, %v174_v7 }
 0x109   :  { %vm457_vm8 = vcmp.lt.s32.totalorder %v456_v8, 0 }
 0x10a   :  { %v177_v10 = vsel %vm457_vm8, 0, %v456_v8 }
 0x10b   :  { %v178_v12 = vsub.s32 32, %v177_v10  ;;  %v182_v13 = vsub.s32 4294967266, %v177_v10  ;;  %v179_v14 = vshll.u32 %v170_v4, %v177_v10 }
 0x10d   :  { %v180_v16 = vshrl.u32 %v162_v11, %v178_v12  ;;  %v183_v17 = vadd.s32 127, %v182_v13 }
 0x10f   :  { %v181_v18 = vor.u32 %v180_v16, %v179_v14  ;;  %v184_v19 = vshll.u32 %v183_v17, 23 }
 0x111   :  { %v185_v20 = vor.u32 4788187, %v184_v19  ;;  %v188_v22 = vcvt.s32.f32 %v181_v18 }
 0x113   :  { %v186_v21 = vand.u32 2147483647, %v185_v20 }
 0x115   :  { %v189_v23 = vmul.f32 %v188_v22, %v186_v21 }
 0x117   :  { %v190_v25 = vxor.u32 2147483648, %v189_v23 }
 0x119   :  { %v191_v26 = vsel %vm108_vm9, %v190_v25, %v189_v23 }
 0x11a   :  { %v194_v28 = vsel %vm107_vm10, %v599_v9, %v191_v26  ;;  %v512_v9 = vld [vmem:[%s644_s4] sm:$0xff]   ;;  %s555_s4 = smov [#allocation2]  }
 0x11b   :  { %513 = vcosq.f32 %v194_v28  ;;  %477 = vmatpush3.bf16.msra.mxu1 %v512_v9  ;;  %s444_s27 = sshll.u32 %s555_s4, 4  ;;  %s445_s27 = int_to_ptr.vmem [resolvable:$true] %s444_s27 }
 0x11c   :  { %515 = vsinq.f32 %v194_v28  ;;  %s517_s28 = scalar_lea.vmem %s445_s27, 128  ;;  %p522_p1 = scmp.lt.s32.totalorder %s445_s27, %s445_s27 }
 0x11d   :  { %p518_p0 = scmp.ne.s32.totalorder %s445_s27, %s517_s28  ;;  %p523_p2 = scmp.lt.s32.totalorder %s517_s28, %s517_s28 }
 0x11f   :  { %p524_p3 = por %p523_p2, %p522_p1 }
 0x121   :  { %p525_p4 = pnand %p524_p3, %p518_p0 }
 0x125   :  { %v514_v33 = vpop.eup %513 }
 0x126   :  { %v516_v34 = vpop.eup %515  ;;  %v205_v35 = vxor.u32 2147483648, %v514_v33 }
 0x127   :  { %v202_v36 = vxor.u32 2147483648, %v516_v34 }
 0x128   :  { %v206_v37 = vsel %vm204_vm11, %v205_v35, %v516_v34  ;;  %v310_v15 = vsel %vm308_vm12, %v205_v35, %v516_v34 }
 0x129   :  { %v203_v38 = vsel %vm201_vm13, %v514_v33, %v202_v36  ;;  %v307_v39 = vsel %vm305_vm14, %v514_v33, %v202_v36 }
 0x12a   :  { %v207_v40 = vsel %vm200_vm15, %v203_v38, %v206_v37  ;;  %v311_v41 = vsel %vm304_vm0, %v307_v39, %v310_v15 }
 0x12b   :  { %v208_v42 = vsel %vm198_vm2, nan, %v207_v40  ;;  %v312_v43 = vsel %vm198_vm2, nan, %v311_v41 }
 0x12c   :  { %327 = vperm.xlu1 %504, %v208_v42   ;;  %v313_v44 = vsub.f32 %v312_v43, %v208_v42 }
 0x12e   :  { %321 = vperm.xlu0 %506, %v313_v44  }
 0x130   :  { %505 = vset.pattern.permute.xlu1 %v551_v45 }
 0x131   :  { %341 = vperm.xlu1 %505, %v208_v42  }
 0x132   :  { %507 = vset.pattern.permute.xlu0 %v551_v45 }
 0x133   :  { %336 = vperm.xlu0 %507, %v313_v44  }
 0x135   :  { %509 = vset.pattern.permute.xlu1 %v552_v46 }
 0x136   :  { %351 = vperm.xlu1 %509, %v313_v44  }
 0x137   :  { %508 = vset.pattern.permute.xlu0 %v552_v46 }
 0x138   :  { %356 = vperm.xlu0 %508, %v208_v42  }
 0x13a   :  { %510 = vset.pattern.permute.xlu1 %v553_v47 }
 0x13b   :  { %366 = vperm.xlu1 %510, %v313_v44  }
 0x13c   :  { %511 = vset.pattern.permute.xlu0 %v553_v47 }
 0x13f   :  { %371 = vperm.xlu1 %510, %v208_v42  }
 0x1ab   :  { %v328_v50 = vpop.permute.xlu1 %327 }
 0x1ad   :  { %v322_v53 = vpop.permute.xlu0 %321 }
 0x1ae   :  { %v324_v62 = vmul.f32 %v322_v53, %v318_v58 }
 0x1b0   :  { %v342_v57 = vpop.permute.xlu1 %341  ;;  %v330_v4 = vadd.f32 %v328_v50, %v324_v62 }
 0x1b2   :  { %v337_v59 = vpop.permute.xlu0 %336 }
 0x1b3   :  { %v339_v60 = vmul.f32 %v337_v59, %v334_v55 }
 0x1b5   :  { %v352_v63 = vpop.permute.xlu1 %351  ;;  %v344_v1 = vadd.f32 %v342_v57, %v339_v60 }
 0x1b6   :  { %v354_v2 = vmul.f32 %v352_v63, %v349_v61 }
 0x1b7   :  { %v357_v3 = vpop.permute.xlu0 %356  ;;  %v345_v7 = vmul.f32 %v344_v1, %v330_v4 }
 0x1b8   :  { %v359_v8 = vadd.f32 %v357_v3, %v354_v2 }
 0x1ba   :  { %v367_v6 = vpop.permute.xlu1 %366  ;;  %v360_v12 = vmul.f32 %v359_v8, %v345_v7 }
 0x1bb   :  { %v369_v10 = vmul.f32 %v367_v6, %v364_v5 }
 0x1be   :  { %v372_v11 = vpop.permute.xlu1 %371 }
 0x1bf   :  { %v374_v13 = vadd.f32 %v372_v11, %v369_v10 }
 0x1c1   :  { %v375_v14 = vmul.f32 %v374_v13, %v360_v12 }
 0x1c3   :  { %v376_v16 = vpack.c.bf16 %v375_v14, %v375_v14 }
 0x1c5   :  { %479 = vmatmul.mubr.msk.bf16.vlgmr.msra.gmra.mrb[0].mxu1 %vm32_vm1, %v376_v16 }
 0x298   :  { %v422_v17 = vpop.f32.mrb[0].mxu1 }
 0x299   :  { %v428_v18 = vmul.f32 %v422_v17, %v422_v17  ;;  %v480_v19 = vpop.f32.mrb[1].mxu1 }
 0x29a   :  { %v425_v20 = vpop.f32.mrb[2].mxu1 }
 0x29b   :  { %430 = vrot.lane.b32.xlu0 %v428_v18, %s554_s3  ;;  %v481_v21 = vpop.f32.mrb[3].mxu1 }
 0x30d   :  { %v431_v22 = vpop.permute.xlu0 %430 }
 0x30e   :  { %v433_v23 = vadd.f32 %v431_v22, %v428_v18 }
 0x310   :  { %v434_v24 = vmul.f32 16.0, %v433_v23 }
 0x312   :  { %v435_v25 = vmax.f32 %v434_v24, 0.0 }
 0x314   :  { %v436_v26 = vmin.f32 %v435_v25, 1.0 }
 0x316   :  { %437 = vst.msk [vmem:[#allocation2] sm:$0xff] %vm32_vm1, %v436_v26 }
 0x317   :  { %528 = shalt.err (!%p525_p4)
}
 0x318   :  { %s529_s6 = scalar_lea.hbm %s645_s5, 128 }
 0x319   :  { %p530_p5 = scmp.ne.s32.totalorder %s645_s5, %s529_s6  ;;  %p533_p6 = scmp.lt.u32.totalorder %s529_s6, %s645_s5 }
 0x31b   :  { %p535_p7 = pnand %p533_p6, %p530_p5 }
 0x31d   :  { %538 = shalt.err (!%p535_p7)
}
 0x31e   :  { %447 = dma.vmem_to_hbm [thread:$0]  %s445_s27, 128, %s645_s5, [#allocation3]  }
 0x31f   :  { %539 = dma.done.wait [#allocation3], 128  }
 0x320   :  { %540 = vsyncadd [#allocation3], 4294967168 }
 0x321   :  { %451 = vsyncpa [#allocation3], 1 }

</bundles_post_ra>
